<compile_context>
chip_gen: v5e
topology: v5e:2x2
jax: 0.10.0
libtpu: 0.0.40
codegen_flags: <defaults>
</compile_context>

<pallas_src>
import jax
import jax.numpy as jnp
from jax import lax
from jax.experimental import pallas as pl
from jax.experimental.pallas import tpu as pltpu
import numpy as np


def _round_up(v, m):
    return ((v + m - 1) // m) * m


def spline_prop_kernel(col_ref, row_ref, ea_ref, x_ref, out_ref, acc_ref):
    """col_ref: VMEM [e_blk, 1]  int32  (source node per edge, sublane axis)
       row_ref: VMEM [1, e_blk]  int32  (destination node per edge, lane axis)
       ea_ref : VMEM [1, e_blk]  f32    (edge_attr, lane axis)
       x_ref  : VMEM [N_pad, c_blk]     (node features, all nodes resident)
       out_ref: VMEM [N_pad, c_blk]
       acc_ref: VMEM [N_pad, c_blk] f32 (accumulator resident across edge chunks)"""
    ei = pl.program_id(1)

    @pl.when(ei == 0)
    def _init():
        acc_ref[...] = jnp.zeros_like(acc_ref)

    e_blk = col_ref.shape[0]
    n_pad = x_ref.shape[0]

    # Gather one-hot: G[i, n] = (col[i] == n).  Padded edges use col = 0, but their
    # scatter column is all-zero (row = -1), so they contribute nothing.
    gather_oh = (lax.broadcasted_iota(jnp.int32, (e_blk, n_pad), 1)
                 == col_ref[...]).astype(jnp.float32)
    # gathered[i, :] = x[col[i], :]  (exact: one-hot entries are 0/1)
    gathered = jnp.dot(gather_oh, x_ref[...].astype(jnp.float32),
                       preferred_element_type=jnp.float32)          # [e_blk, c_blk]

    # Scatter matrix with the B-spline kernel folded in:
    #   S[n, i] = exp(-edge_attr[i]) * (row[i] == n);  row = -1 -> zero column.
    b = jnp.exp(-ea_ref[...])                                       # [1, e_blk] (EUP)
    scatter = (lax.broadcasted_iota(jnp.int32, (n_pad, e_blk), 0)
               == row_ref[...]).astype(jnp.float32) * b             # [n_pad, e_blk]

    acc_ref[...] += jnp.dot(scatter, gathered,
                            preferred_element_type=jnp.float32)

    @pl.when(ei == pl.num_programs(1) - 1)
    def _finalize():
        out_ref[...] = acc_ref[...].astype(out_ref.dtype)


def spline_feature_propagation(x, edge_index, edge_attr):
    """x: [N, C], edge_index: [2, E] int, edge_attr: [E] -> [N, C]."""
    N, C = x.shape
    E = edge_attr.shape[0]

    # Lane-friendly padded sizes / block sizes (multiples of 128 on the lane axis).
    c_blk = min(256, _round_up(C, 128))
    C_pad = _round_up(C, c_blk)
    e_blk = min(256, _round_up(E, 128))
    E_pad = _round_up(E, e_blk)
    N_pad = _round_up(N, 8)
    # TODO(synk): all N_pad node rows stay VMEM-resident per channel block; for very
    # large graphs the node axis would additionally need tiling / paged gather.

    x_p = jnp.zeros((N_pad, C_pad), x.dtype).at[:N, :C].set(x)
    row = edge_index[0].astype(jnp.int32)
    col = edge_index[1].astype(jnp.int32)
    # Pad rows with -1 (matches no node -> zero contribution), cols/attrs with 0.
    row_p = jnp.full((E_pad,), -1, dtype=jnp.int32).at[:E].set(row).reshape(1, E_pad)
    col_p = jnp.zeros((E_pad,), jnp.int32).at[:E].set(col).reshape(E_pad, 1)
    ea_p = jnp.zeros((E_pad,), jnp.float32).at[:E].set(
        edge_attr.astype(jnp.float32)).reshape(1, E_pad)

    grid = (C_pad // c_blk, E_pad // e_blk)

    grid_spec = pltpu.PrefetchScalarGridSpec(
        num_scalar_prefetch=0,
        grid=grid,
        in_specs=[
            pl.BlockSpec((e_blk, 1), lambda ci, ei: (ei, 0)),       # col  (sublane)
            pl.BlockSpec((1, e_blk), lambda ci, ei: (0, ei)),       # row  (lane)
            pl.BlockSpec((1, e_blk), lambda ci, ei: (0, ei)),       # edge_attr
            pl.BlockSpec((N_pad, c_blk), lambda ci, ei: (0, ci)),   # x
        ],
        out_specs=pl.BlockSpec((N_pad, c_blk), lambda ci, ei: (0, ci)),
        scratch_shapes=[pltpu.VMEM((N_pad, c_blk), jnp.float32)],
    )

    out_p = pl.pallas_call(
        spline_prop_kernel,
        out_shape=jax.ShapeDtypeStruct((N_pad, C_pad), x.dtype),
        grid_spec=grid_spec,
        compiler_params=pltpu.CompilerParams(
            dimension_semantics=("parallel", "arbitrary")),
    )(col_p, row_p, ea_p, x_p)

    return out_p[:N, :C]


if __name__ == "__main__":
    # Small shapes that still exercise padding and a 2x2 grid
    # (channels blocked "parallel", edge chunks "arbitrary").
    N, C, E = 20, 320, 300

    key = jax.random.PRNGKey(0)
    k1, k2, k3, k4, k5 = jax.random.split(key, 5)

    x = jax.random.normal(k1, (N, C), dtype=jnp.float32)
    row = jax.random.randint(k2, (E,), 0, N, dtype=jnp.int32)
    col = jax.random.randint(k3, (E,), 0, N, dtype=jnp.int32)
    edge_index = jnp.stack([row, col], axis=0)
    edge_attr = jax.random.uniform(k4, (E,), dtype=jnp.float32)

    # Deterministic xavier-uniform init of self.weight (in_channels, out_channels),
    # matching __init__. forward() never consumes it.
    in_ch = out_ch = C
    bound = float(np.sqrt(6.0 / (in_ch + out_ch)))
    _weight = jax.random.uniform(k5, (in_ch, out_ch), minval=-bound, maxval=bound,
                                 dtype=jnp.float32)
    del _weight  # TODO(synk): self.weight is unused by forward() in the reference module.

    out = spline_feature_propagation(x, edge_index, edge_attr)
    out = jax.block_until_ready(out)

    # Pure-numpy reference of the PyTorch loop.
    Bk = np.exp(-np.asarray(edge_attr))
    x_np = np.asarray(x)
    r_np, c_np = np.asarray(row), np.asarray(col)
    ref = np.zeros((N, C), dtype=np.float32)
    for i in range(E):
        ref[r_np[i]] += Bk[i] * x_np[c_np[i]]

    np.testing.assert_allclose(np.asarray(out), ref, rtol=1e-5, atol=1e-5)
    print("KERNEL_OK")
</pallas_src>

<mosaic_0001>
module attributes {stable_mosaic.version = 11 : i64} {
  func.func @spline_prop_kernel(%arg0: i32, %arg1: i32, %arg2: memref<256x1xi32, #tpu.memory_space<vmem>>, %arg3: memref<1x256xi32, #tpu.memory_space<vmem>>, %arg4: memref<1x256xf32, #tpu.memory_space<vmem>>, %arg5: memref<24x256xf32, #tpu.memory_space<vmem>>, %arg6: memref<24x256xf32, #tpu.memory_space<vmem>>, %arg7: memref<24x256xf32, #tpu.memory_space<vmem>>) attributes {dimension_semantics = [#tpu.dimension_semantics<parallel>, #tpu.dimension_semantics<arbitrary>], iteration_bounds = array<i64: 2, 2>, scalar_prefetch = 0 : i64, scratch_operands = 1 : i64, tpu.core_type = #tpu.core_type<tc>, window_params = [{transform_indices = @transform_0, window_bounds = array<i64: 256, 1>}, {transform_indices = @transform_1, window_bounds = array<i64: 1, 256>}, {transform_indices = @transform_2, window_bounds = array<i64: 1, 256>}, {transform_indices = @transform_3, window_bounds = array<i64: 24, 256>}, {transform_indices = @transform_4, window_bounds = array<i64: 24, 256>}]} {
    %c0_i32 = arith.constant 0 : i32
    %0 = arith.cmpi eq, %arg1, %c0_i32 : i32
    %1 = arith.extui %0 : i1 to i32
    %c0_i32_0 = arith.constant 0 : i32
    %2 = arith.cmpi ne, %1, %c0_i32_0 : i32
    scf.if %2 {
      %cst_15 = arith.constant 0.000000e+00 : f32
      %30 = vector.broadcast %cst_15 : f32 to vector<24x256xf32>
      %c0_16 = arith.constant 0 : index
      %c0_17 = arith.constant 0 : index
      %31 = vector.load %arg7[%c0_16, %c0_17] : memref<24x256xf32, #tpu.memory_space<vmem>>, vector<24x256xf32>
      tpu.vector_store %arg7[%c0_16, %c0_17], %30 {strides = array<i32>} : memref<24x256xf32, #tpu.memory_space<vmem>>, vector<24x256xf32>,
    } else {
    }
    %3 = tpu.iota {dimensions = array<i32: 1>} : vector<256x24xi32>
    %c0 = arith.constant 0 : index
    %c0_1 = arith.constant 0 : index
    %4 = vector.load %arg2[%c0, %c0_1] : memref<256x1xi32, #tpu.memory_space<vmem>>, vector<256x1xi32>
    %5 = vector.broadcast %4 : vector<256x1xi32> to vector<256x24xi32>
    %6 = arith.cmpi eq, %3, %5 : vector<256x24xi32>
    %7 = arith.extui %6 : vector<256x24xi1> to vector<256x24xi32>
    %8 = arith.sitofp %7 : vector<256x24xi32> to vector<256x24xf32>
    %c0_2 = arith.constant 0 : index
    %c0_3 = arith.constant 0 : index
    %9 = vector.load %arg5[%c0_2, %c0_3] : memref<24x256xf32, #tpu.memory_space<vmem>>, vector<24x256xf32>
    %cst = arith.constant dense<0.000000e+00> : vector<256x256xf32>
    %10 = tpu.matmul %8, %9, %cst {dimension_numbers = #tpu.dot_dimension_numbers<[1], [0], [0], [1], [0, 0, 1, 1], [], []>} : vector<256x24xf32>, vector<24x256xf32>, vector<256x256xf32> -> vector<256x256xf32>
    %c0_4 = arith.constant 0 : index
    %c0_5 = arith.constant 0 : index
    %11 = vector.load %arg4[%c0_4, %c0_5] : memref<1x256xf32, #tpu.memory_space<vmem>>, vector<1x256xf32>
    %cst_6 = arith.constant 0.000000e+00 : f32
    %12 = vector.broadcast %cst_6 : f32 to vector<1x256xf32>
    %13 = arith.subf %12, %11 : vector<1x256xf32>
    %14 = math.exp %13 : vector<1x256xf32>
    %15 = tpu.iota {dimensions = array<i32: 0>} : vector<24x256xi32>
    %c0_7 = arith.constant 0 : index
    %c0_8 = arith.constant 0 : index
    %16 = vector.load %arg3[%c0_7, %c0_8] : memref<1x256xi32, #tpu.memory_space<vmem>>, vector<1x256xi32>
    %17 = vector.broadcast %16 : vector<1x256xi32> to vector<24x256xi32>
    %18 = arith.cmpi eq, %15, %17 : vector<24x256xi32>
    %19 = arith.extui %18 : vector<24x256xi1> to vector<24x256xi32>
    %20 = arith.sitofp %19 : vector<24x256xi32> to vector<24x256xf32>
    %21 = vector.broadcast %14 : vector<1x256xf32> to vector<24x256xf32>
    %22 = arith.mulf %20, %21 : vector<24x256xf32>
    %c0_9 = arith.constant 0 : index
    %c0_10 = arith.constant 0 : index
    %23 = vector.load %arg7[%c0_9, %c0_10] : memref<24x256xf32, #tpu.memory_space<vmem>>, vector<24x256xf32>
    %cst_11 = arith.constant dense<0.000000e+00> : vector<24x256xf32>
    %24 = tpu.matmul %22, %10, %cst_11 {dimension_numbers = #tpu.dot_dimension_numbers<[1], [0], [0], [1], [0, 0, 1, 1], [], []>} : vector<24x256xf32>, vector<256x256xf32>, vector<24x256xf32> -> vector<24x256xf32>
    %25 = arith.addf %23, %24 : vector<24x256xf32>
    %c0_12 = arith.constant 0 : index
    %c0_13 = arith.constant 0 : index
    %26 = vector.load %arg7[%c0_12, %c0_13] : memref<24x256xf32, #tpu.memory_space<vmem>>, vector<24x256xf32>
    tpu.vector_store %arg7[%c0_12, %c0_13], %25 {strides = array<i32>} : memref<24x256xf32, #tpu.memory_space<vmem>>, vector<24x256xf32>,
    %c1_i32 = arith.constant 1 : i32
    %27 = arith.cmpi eq, %arg1, %c1_i32 : i32
    %28 = arith.extui %27 : i1 to i32
    %c0_i32_14 = arith.constant 0 : i32
    %29 = arith.cmpi ne, %28, %c0_i32_14 : i32
    scf.if %29 {
      %c0_15 = arith.constant 0 : index
      %c0_16 = arith.constant 0 : index
      %30 = vector.load %arg7[%c0_15, %c0_16] : memref<24x256xf32, #tpu.memory_space<vmem>>, vector<24x256xf32>
      %c0_17 = arith.constant 0 : index
      %c0_18 = arith.constant 0 : index
      %31 = vector.load %arg6[%c0_17, %c0_18] : memref<24x256xf32, #tpu.memory_space<vmem>>, vector<24x256xf32>
      tpu.vector_store %arg6[%c0_17, %c0_18], %30 {strides = array<i32>} : memref<24x256xf32, #tpu.memory_space<vmem>>, vector<24x256xf32>,
    } else {
    }
    return
  }
  func.func @transform_0(%arg0: i32, %arg1: i32) -> (i32, i32) {
    %c0_i32 = arith.constant 0 : i32
    %c0_i32_0 = arith.constant 0 : i32
    return %arg1, %c0_i32 : i32, i32
  }
  func.func @transform_1(%arg0: i32, %arg1: i32) -> (i32, i32) {
    %c0_i32 = arith.constant 0 : i32
    %c0_i32_0 = arith.constant 0 : i32
    return %c0_i32, %arg1 : i32, i32
  }
  func.func @transform_2(%arg0: i32, %arg1: i32) -> (i32, i32) {
    %c0_i32 = arith.constant 0 : i32
    %c0_i32_0 = arith.constant 0 : i32
    return %c0_i32, %arg1 : i32, i32
  }
  func.func @transform_3(%arg0: i32, %arg1: i32) -> (i32, i32) {
    %c0_i32 = arith.constant 0 : i32
    %c0_i32_0 = arith.constant 0 : i32
    return %c0_i32, %arg0 : i32, i32
  }
  func.func @transform_4(%arg0: i32, %arg1: i32) -> (i32, i32) {
    %c0_i32 = arith.constant 0 : i32
    %c0_i32_0 = arith.constant 0 : i32
    return %c0_i32, %arg0 : i32, i32
  }
}

</mosaic_0001>

<bundles_post_ra>
// kernel: tpu_custom_call.1
= control target key start
LH: loop header
LB: loop body
LE: loop exit
PB: predicated region body
PF: predicated region fallthrough
CT: control target
= control target key end

     0   :  { %s1942_s0 = inlined_call_operand.vmem [shape: s32[512,1], index: 0, kind: input, shape index: {}]   ;;  %s1943_s1 = inlined_call_operand.vmem [shape: s32[1,512], index: 1, kind: input, shape index: {}]   ;;  %s1944_s2 = inlined_call_operand.vmem [shape: f32[1,512], index: 2, kind: input, shape index: {}]   ;;  %s1945_s3 = inlined_call_operand.vmem [shape: f32[24,512], index: 3, kind: input, shape index: {}]   ;;  %s1946_s4 = inlined_call_operand.hbm [shape: f32[24,512], index: 4, kind: output, shape index: {}]  }
   0x1   :  { %1948 = sst [smem:[#allocation7_spill]] %s1945_s3 }
   0x2   :  { %9 = vsyncpa [#allocation5], 0 }
   0x3   :  { %11 = vsyncpa [#allocation5 + $0x1], 0  ;;  %s1506_s15 = smov 0   ;;  %s1508_s16 = smov 0  }
   0x4   :  { %s1510_s17 = smov 0   ;;  %s1512_s18 = smov 0  }
   0x5   :  { %s1514_s19 = smov 0   ;;  %s1516_s20 = smov 0  }
   0x6   :  { %s1518_s21 = smov 0   ;;  %s1520_s22 = smov 0  }
   0x7 LB: > { %s1168_s23 = sadd.s32 4294967295, %s1473_s22   ;;  %s1169_s24 = sadd.s32 4294967294, %s1473_s22   ;;  %s1473_s22 = sphi %s1520_s22, %s17_s22   ;;  %s1469_s21 = sphi %s1518_s21, %s1960_s21   ;;  %s1465_s20 = sphi %s1516_s20, %s1959_s20   ;;  %s1461_s19 = sphi %s1514_s19, %s1958_s19   ;;  %s1457_s18 = sphi %s1512_s18, %s1957_s18   ;;  %s1453_s17 = sphi %s1510_s17, %s1956_s17   ;;  %s1449_s16 = sphi %s1508_s16, %s1955_s16   ;;  %s1445_s15 = sphi %s1506_s15, %s1954_s15  }
   0x8   : > { %s26_s25 = sadd.s32 1, %s1465_s20  ;;  %s29_s26 = sadd.s32 1, %s1469_s21 }
   0x9   : > { %p27_p0 = scmp.ge.s32.totalorder %s26_s25, 2  ;;  %p121_p1 = scmp.ne.s32.totalorder %s1453_s17, %s1449_s16 }
   0xa   : > { %p122_p2 = scmp.eq.s32.totalorder %s1473_s22, 0  ;;  %p151_p4 = scmp.eq.s32.totalorder %s1168_s23, 3 }
   0xb   : > { %s1962_s25 = smov (%p27_p0, %s26_s25), 0  ;;  %s1964_s26 = smov (!%p27_p0, %s29_s26), %s1469_s21 }
   0xc   : > { %p1556_p3 = por %p122_p2, %p121_p1  ;;  %p31_p5 = scmp.ge.s32.totalorder %s1964_s26, 2 }
   0xd   : > { %p156_p6 = scmp.ne.s32.totalorder %s1449_s16, %s1445_s15  ;;  %p1562_p7 = por %p151_p4, %p121_p1 }
   0xe   : > { %p157_p8 = scmp.eq.s32.totalorder %s1169_s24, 3  ;;  %s1966_s26 = smov (%p31_p5, %s1964_s26), 0 }
   0xf   : > { %s111_s30 = ssub.s32 %s1469_s21, %s1966_s26  ;;  %s114_s5 = sadd.s32 1, %s1453_s17 }
  0x10   : > { %p1568_p9 = por %p157_p8, %p156_p6  ;;  %p112_p10 = scmp.eq.s32.totalorder %s111_s30, 0 }
  0x11   : > { %p1171_p11 = scmp.ge.s32.totalorder %s1473_s22, 4 }
  0x12   : > { %s1576_s6 = scalar_select %p112_p10, %s1453_s17, %s114_s5  }
  0x13   : > { %173 = sbr.rel (%p1171_p11) target bundleno = 40 (0x28), region = 16 }
  0x18   : > { %201 = sbr.rel (!%p1556_p3) target bundleno = 40 (0x28), region = 32  ;;  %s203_s7 = sand.u32 (%p1556_p3), 1, %s1453_s17  }
  0x19   : > { %s1287_s8 = sshll.u32 (%p1556_p3), %s1469_s21, 4  ;;  %s1295_s9 = smul.u32 (%p1556_p3), 48, %s203_s7 }
  0x1a   : > { %s1952_s3 = sld [smem:[#allocation7_spill]] (%p1556_p3) }
  0x1b   : > { %s205_s13 = scalar_lea.vmem (%p1556_p3), [#allocation3], %s1295_s9 }
  0x20   : > { %s208_s12 = scalar_lea.vmem %s1952_s3, %s1287_s8 }
  0x21   : > { %v221_v0 = vld [vmem:[%s208_s12] sm:$0xff]  ;;  %v223_v1 = vld [vmem:[%s208_s12 + $0x8] sm:$0xff] }
  0x22   : > { %v225_v2 = vld [vmem:[%s208_s12 + $0x20] sm:$0xff]  ;;  %222 = vst [vmem:[%s205_s13] sm:$0xff] %v221_v0  ;;  %v227_v3 = vld [vmem:[%s208_s12 + $0x28] sm:$0xff] }
  0x23   : > { %224 = vst [vmem:[%s205_s13 + $0x8] sm:$0xff] %v223_v1  ;;  %v229_v4 = vld [vmem:[%s208_s12 + $0x40] sm:$0xff]  ;;  %v231_v5 = vld [vmem:[%s208_s12 + $0x48] sm:$0xff] }
  0x24   : > { %226 = vst [vmem:[%s205_s13 + $0x10] sm:$0xff] %v225_v2 }
  0x25   : > { %228 = vst [vmem:[%s205_s13 + $0x18] sm:$0xff] %v227_v3 }
  0x26   : > { %230 = vst [vmem:[%s205_s13 + $0x20] sm:$0xff] %v229_v4 }
  0x27   : > { %232 = vst [vmem:[%s205_s13 + $0x28] sm:$0xff] %v231_v5 }
  0x28 PF: > { %p1174_p12 = scmp.ge.s32.totalorder %s1473_s22, 1  ;;  %p237_p13 = scmp.lt.s32.totalorder %s1473_s22, 5 }
  0x2a   : > { %p238_p0 = pnand %p1174_p12, %p237_p13 }
  0x2b   : > { %s1947_s14 = sand.u32 (!%p238_p0), 1, %s1449_s16   ;;  %s1175_s23 = sshll.u32 (!%p238_p0), %s1457_s18, 5 }
  0x2c   : > { %241 = sbr.rel (%p238_p0) target bundleno = 689 (0x2b1), region = 55  ;;  %p283_p1 = scmp.lt.s32.totalorder (!%p238_p0), %s1175_s23, 63 }
  0x2d   : > { %s1296_s24 = smul.u32 (!%p238_p0), 48, %s1947_s14  ;;  %s1177_s27 = sshll.u32 (!%p238_p0), %s1457_s18, 1 }
  0x2e   : > { %p289_p2 = scmp.lt.s32.totalorder (!%p238_p0), %s1177_s27, 3  ;;  %p1179_p3 = scmp.ne.s32.totalorder (!%p238_p0), %s1457_s18, 0 }
  0x2f   : > { %s1608_s3 = scalar_lea.vmem (!%p238_p0), [#allocation3], %s1296_s24 }
  0x31   : > { %s1968_s23 = smov (!%p283_p1, %s1175_s23), 63  ;;  %s1970_s27 = smov (!%p289_p2, %s1177_s27), 3 }
  0x32   : > { %s1176_s30 = sshll.u32 %s1968_s23, 3  ;;  %s291_s11 = scalar_lea.vmem %s1943_s1, %s1970_s27 }
  0x33   : > { %s1596_s8 = scalar_lea.vmem %s1942_s0, %s1176_s30  ;;  %s296_s14 = scalar_lea.vmem %s1944_s2, %s1970_s27 }
  0x34   : > { %s1610_s23 = scalar_lea.vmem [#allocation4], %s1296_s24  ;;  %303 = sbr.rel (%p1179_p3) target bundleno = 64 (0x40), region = 63 }
  0x39   : > { %v1475_v6 = vmov 0.0  }
  0x3a   : > { %304 = vst [vmem:[#allocation2 + $0x28] sm:$0xff] %v1475_v6 }
  0x3b   : > { %305 = vst [vmem:[#allocation2 + $0x10] sm:$0xff] %v1475_v6 }
  0x3c   : > { %306 = vst [vmem:[#allocation2 + $0x8] sm:$0xff] %v1475_v6 }
  0x3d   : > { %307 = vst [vmem:[#allocation2] sm:$0xff] %v1475_v6 }
  0x3e   : > { %308 = vst [vmem:[#allocation2 + $0x18] sm:$0xff] %v1475_v6 }
  0x3f   : > { %309 = vst [vmem:[#allocation2 + $0x20] sm:$0xff] %v1475_v6 }
  0x40 PF: > { %v316_v7 = vld [vmem:[%s1596_s8 + $0x20] sm:$0xff]  ;;  %v314_v8 = vld [vmem:[%s1596_s8 + $0x10] sm:$0xff]  ;;  %v1476_v10 = vmov 0   ;;  %v317_v11 = vld [vmem:[%s1596_s8 + $0x28] sm:$0xff]  ;;  %v310_v49 = vlaneseq  ;;  %vm542_vm1 = vcmask 195584   ;;  %v1477_v54 = vmov 0.0  }
  0x41   : > { %v312_v9 = vld [vmem:[%s1596_s8] sm:$0xff]  ;;  %1376 = vset.pattern.permute.xlu2 %v1476_v10  ;;  %1375 = vset.pattern.permute.xlu1 %v1476_v10  ;;  %v315_v12 = vld [vmem:[%s1596_s8 + $0x18] sm:$0xff]  ;;  %v313_v13 = vld [vmem:[%s1596_s8 + $0x8] sm:$0xff]  ;;  %p1282_p4 = scmp.ne.s32.totalorder %s1457_s18, 1 }
  0x42   : > { %1374 = vset.pattern.permute.xlu0 %v1476_v10  ;;  %357 = vperm.xlu2 %1376, %v316_v7   ;;  %v319_v14 = vld [vmem:[%s1596_s8 + $0x38] sm:$0xff]  ;;  %v333_v15 = vld [vmem:[%s1596_s8 + $0xa8] sm:$0xff]  ;;  %v318_v16 = vld [vmem:[%s1596_s8 + $0x30] sm:$0xff]  ;;  %v1654_v50 = vand.u32 127, %v310_v49 }
  0x43   : > { %351 = vperm.xlu1 %1375, %v314_v8   ;;  %345 = vperm.xlu0 %1374, %v312_v9   ;;  %v332_v17 = vld [vmem:[%s1596_s8 + $0xa0] sm:$0xff]  ;;  %v334_v19 = vld [vmem:[%s1596_s8 + $0xb0] sm:$0xff]  ;;  %v321_v21 = vld [vmem:[%s1596_s8 + $0x48] sm:$0xff] }
  0x44   : > { %v320_v18 = vld [vmem:[%s1596_s8 + $0x40] sm:$0xff]  ;;  %v335_v22 = vld [vmem:[%s1596_s8 + $0xb8] sm:$0xff]  ;;  %v337_v24 = vld [vmem:[%s1596_s8 + $0xc8] sm:$0xff] }
  0x45   : > { %v336_v20 = vld [vmem:[%s1596_s8 + $0xc0] sm:$0xff]  ;;  %v323_v23 = vld [vmem:[%s1596_s8 + $0x58] sm:$0xff]  ;;  %v322_v25 = vld [vmem:[%s1596_s8 + $0x50] sm:$0xff] }
  0x46   : > { %v339_v26 = vld [vmem:[%s1596_s8 + $0xd8] sm:$0xff]  ;;  %v324_v27 = vld [vmem:[%s1596_s8 + $0x60] sm:$0xff]  ;;  %v338_v28 = vld [vmem:[%s1596_s8 + $0xd0] sm:$0xff] }
  0x47   : > { %v326_v29 = vld [vmem:[%s1596_s8 + $0x70] sm:$0xff]  ;;  %v340_v30 = vld [vmem:[%s1596_s8 + $0xe0] sm:$0xff]  ;;  %v325_v31 = vld [vmem:[%s1596_s8 + $0x68] sm:$0xff] }
  0x48   : > { %v342_v32 = vld [vmem:[%s1596_s8 + $0xf0] sm:$0xff]  ;;  %v327_v33 = vld [vmem:[%s1596_s8 + $0x78] sm:$0xff]  ;;  %v341_v34 = vld [vmem:[%s1596_s8 + $0xe8] sm:$0xff] }
  0x49   : > { %v329_v35 = vld [vmem:[%s1596_s8 + $0x88] sm:$0xff]  ;;  %v343_v36 = vld [vmem:[%s1596_s8 + $0xf8] sm:$0xff]  ;;  %v328_v37 = vld [vmem:[%s1596_s8 + $0x80] sm:$0xff] }
  0x4a   : > { %360 = vperm.xlu2 %1376, %v317_v11   ;;  %v540_v38 = vld [vmem:[%s1608_s3 + $0x20] sm:$0xff]  ;;  %v541_v39 = vld [vmem:[%s1608_s3 + $0x28] sm:$0xff]  ;;  %v538_v40 = vld [vmem:[%s1608_s3 + $0x10] sm:$0xff] }
  0x4b   : > { %354 = vperm.xlu1 %1375, %v315_v12   ;;  %348 = vperm.xlu0 %1374, %v313_v13   ;;  %v539_v41 = vld [vmem:[%s1608_s3 + $0x18] sm:$0xff]  ;;  %v330_v43 = vld [vmem:[%s1596_s8 + $0x90] sm:$0xff]  ;;  %v537_v45 = vld [vmem:[%s1608_s3 + $0x8] sm:$0xff] }
  0x4c   : > { %652 = vmatpush.msra.mxu0 %v540_v38  ;;  %765 = vmatpush.msra.mxu1 %v541_v39  ;;  %v331_v42 = vld [vmem:[%s1596_s8 + $0x98] sm:$0xff]  ;;  %v536_v44 = vld [vmem:[%s1608_s3] sm:$0xff] }
  0x4d   : > { %1292 = vmatpush.msra.mxu3 %v541_v39  ;;  %1289 = vmatpush.msra.mxu2 %v540_v38 }
  0x4e   : > { %653 = vmatpush.msra.mxu0 %v538_v40  ;;  %766 = vmatpush.msra.mxu1 %v539_v41 }
  0x4f   : > { %1293 = vmatpush.msra.mxu3 %v539_v41  ;;  %1290 = vmatpush.msra.mxu2 %v538_v40 }
  0x50   : > { %654 = vmatpush.msra.mxu0 %v536_v44  ;;  %767 = vmatpush.msra.mxu1 %v537_v45 }
  0x51   : > { %1294 = vmatpush.msra.mxu3 %v537_v45  ;;  %1291 = vmatpush.msra.mxu2 %v536_v44 }
  0x52   : > { %366 = vperm.xlu2 %1376, %v319_v14  }
  0x53   : > { %408 = vperm.xlu1 %1375, %v333_v15   ;;  %363 = vperm.xlu0 %1374, %v318_v16  }
  0x5a   : > { %405 = vperm.xlu2 %1376, %v332_v17  }
  0x5b   : > { %369 = vperm.xlu1 %1375, %v320_v18   ;;  %411 = vperm.xlu0 %1374, %v334_v19  }
  0x62   : > { %417 = vperm.xlu2 %1376, %v336_v20  }
  0x63   : > { %372 = vperm.xlu1 %1375, %v321_v21   ;;  %414 = vperm.xlu0 %1374, %v335_v22  }
  0x6a   : > { %378 = vperm.xlu2 %1376, %v323_v23  }
  0x6b   : > { %420 = vperm.xlu1 %1375, %v337_v24   ;;  %375 = vperm.xlu0 %1374, %v322_v25  }
  0x72   : > { %426 = vperm.xlu2 %1376, %v339_v26  }
  0x73   : > { %381 = vperm.xlu1 %1375, %v324_v27   ;;  %423 = vperm.xlu0 %1374, %v338_v28  }
  0x7a   : > { %387 = vperm.xlu2 %1376, %v326_v29  }
  0x7b   : > { %429 = vperm.xlu1 %1375, %v340_v30   ;;  %384 = vperm.xlu0 %1374, %v325_v31  }
  0x82   : > { %435 = vperm.xlu2 %1376, %v342_v32  }
  0x83   : > { %390 = vperm.xlu1 %1375, %v327_v33   ;;  %432 = vperm.xlu0 %1374, %v341_v34  }
  0x8a   : > { %396 = vperm.xlu2 %1376, %v329_v35  }
  0x8b   : > { %438 = vperm.xlu1 %1375, %v343_v36   ;;  %393 = vperm.xlu0 %1374, %v328_v37  }
  0x93   : > { %402 = vperm.xlu1 %1375, %v331_v42   ;;  %399 = vperm.xlu0 %1374, %v330_v43  }
  0x9c   : > { %v358_v46 = vpop.permute.xlu2 %357 }
  0x9d   : > { %vm444_vm8 = vcmp.eq.s32.totalorder %v1654_v50, %v358_v46 }
  0x9e   : > { %v1184_v4 = vsel %vm444_vm8, 1.0, %v1477_v54 }
  0xa4   : > { %v361_v47 = vpop.permute.xlu2 %360 }
  0xa5   : > { %vm445_vm10 = vcmp.eq.s32.totalorder %v1654_v50, %v361_v47 }
  0xa6   : > { %v1185_v9 = vsel %vm445_vm10, 1.0, %v1477_v54 }
  0xac   : > { %v1651_v48 = vpop.permute.xlu2 %366 }
  0xad   : > { %vm447_vm14 = vcmp.eq.s32.totalorder %v1654_v50, %v1651_v48 }
  0xae   : > { %v1187_v17 = vsel %vm447_vm14, 1.0, %v1477_v54 }
  0xb4   : > { %v406_v51 = vpop.permute.xlu2 %405 }
  0xb5   : > { %vm460_vm0 = vcmp.eq.s32.totalorder %v1654_v50, %v406_v51  ;;  %v352_v52 = vpop.permute.xlu1 %351  ;;  %v346_v53 = vpop.permute.xlu0 %345 }
  0xb6   : > { %v1658_v55 = vsel %vm460_vm0, 1.0, %v1477_v54  ;;  %vm440_vm2 = vcmp.eq.s32.totalorder %v1654_v50, %v346_v53  ;;  %vm442_vm4 = vcmp.eq.s32.totalorder %v1654_v50, %v352_v52 }
  0xb7   : > { %v1180_v56 = vsel %vm440_vm2, 1.0, %v1477_v54  ;;  %1264 = vmatmul.msk.f32.vlgmr.msra.gmra.mxu3 %vm542_vm1, %v1658_v55  ;;  %v1182_v60 = vsel %vm442_vm4, 1.0, %v1477_v54 }
  0xb8   : > { %1212 = vmatmul.msk.f32.vlgmr.msra.gmra.mxu0 %vm542_vm1, %v1180_v56  ;;  %1244 = vmatmul.msk.f32.vlgmr.msra.gmra.mxu1 %vm542_vm1, %v1180_v56 }
  0xbc   : > { %v418_v8 = vpop.permute.xlu2 %417 }
  0xbd   : > { %v355_v57 = vpop.permute.xlu1 %354  ;;  %v349_v58 = vpop.permute.xlu0 %348  ;;  %vm464_vm11 = vcmp.eq.s32.totalorder %v1654_v50, %v418_v8 }
  0xbe   : > { %vm441_vm3 = vcmp.eq.s32.totalorder %v1654_v50, %v349_v58  ;;  %vm443_vm6 = vcmp.eq.s32.totalorder %v1654_v50, %v355_v57  ;;  %v1204_v10 = vsel %vm464_vm11, 1.0, %v1477_v54 }
  0xbf   : > { %v1181_v59 = vsel %vm441_vm3, 1.0, %v1477_v54  ;;  %v1183_v2 = vsel %vm443_vm6, 1.0, %v1477_v54 }
  0xc0   : > { %1213 = vmatmul.msk.f32.gmra.mxu0 %vm542_vm1, %v1181_v59  ;;  %1245 = vmatmul.msk.f32.gmra.mxu1 %vm542_vm1, %v1181_v59 }
  0xc4   : > { %v379_v15 = vpop.permute.xlu2 %378 }
  0xc5   : > { %v409_v61 = vpop.permute.xlu1 %408  ;;  %v364_v62 = vpop.permute.xlu0 %363 }
  0xc6   : > { %vm461_vm5 = vcmp.eq.s32.totalorder %v1654_v50, %v409_v61  ;;  %vm446_vm12 = vcmp.eq.s32.totalorder %v1654_v50, %v364_v62 }
  0xc7   : > { %v1201_v63 = vsel %vm461_vm5, 1.0, %v1477_v54  ;;  %v1186_v13 = vsel %vm446_vm12, 1.0, %v1477_v54 }
  0xc8   : > { %1214 = vmatmul.msk.f32.gmra.mxu0 %vm542_vm1, %v1182_v60  ;;  %1233 = vmatmul.msk.f32.vlgmr.msra.gmra.mxu2 %vm542_vm1, %v1201_v63 }
  0xc9   : > { %1246 = vmatmul.msk.f32.gmra.mxu1 %vm542_vm1, %v1182_v60  ;;  %1265 = vmatmul.msk.f32.gmra.mxu3 %vm542_vm1, %v1201_v63 }
  0xcc   : > { %v427_v20 = vpop.permute.xlu2 %426 }
  0xcd   : > { %v370_v0 = vpop.permute.xlu1 %369  ;;  %v412_v1 = vpop.permute.xlu0 %411  ;;  %vm467_vm0 = vcmp.eq.s32.totalorder %v1654_v50, %v427_v20 }
  0xce   : > { %vm462_vm7 = vcmp.eq.s32.totalorder %v1654_v50, %v412_v1  ;;  %vm448_vm2 = vcmp.eq.s32.totalorder %v1654_v50, %v370_v0  ;;  %v1207_v21 = vsel %vm467_vm0, 1.0, %v1477_v54 }
  0xcf   : > { %v1202_v3 = vsel %vm462_vm7, 1.0, %v1477_v54  ;;  %v1188_v22 = vsel %vm448_vm2, 1.0, %v1477_v54  ;;  %vm451_vm7 = vcmp.eq.s32.totalorder %v1654_v50, %v379_v15 }
  0xd0   : > { %1215 = vmatmul.msk.f32.gmra.mxu0 %vm542_vm1, %v1183_v2  ;;  %1234 = vmatmul.msk.f32.gmra.mxu2 %vm542_vm1, %v1202_v3  ;;  %v1191_v33 = vsel %vm451_vm7, 1.0, %v1477_v54 }
  0xd1   : > { %1247 = vmatmul.msk.f32.gmra.mxu1 %vm542_vm1, %v1183_v2  ;;  %1266 = vmatmul.msk.f32.gmra.mxu3 %vm542_vm1, %v1202_v3 }
  0xd4   : > { %v388_v25 = vpop.permute.xlu2 %387 }
  0xd5   : > { %v415_v5 = vpop.permute.xlu0 %414  ;;  %v373_v6 = vpop.permute.xlu1 %372  ;;  %vm454_vm12 = vcmp.eq.s32.totalorder %v1654_v50, %v388_v25 }
  0xd6   : > { %vm463_vm9 = vcmp.eq.s32.totalorder %v1654_v50, %v415_v5  ;;  %vm449_vm3 = vcmp.eq.s32.totalorder %v1654_v50, %v373_v6  ;;  %v1194_v39 = vsel %vm454_vm12, 1.0, %v1477_v54 }
  0xd7   : > { %v1203_v7 = vsel %vm463_vm9, 1.0, %v1477_v54  ;;  %v1189_v26 = vsel %vm449_vm3, 1.0, %v1477_v54 }
  0xd8   : > { %1216 = vmatmul.msk.f32.gmra.mxu0 %vm542_vm1, %v1184_v4  ;;  %1235 = vmatmul.msk.f32.gmra.mxu2 %vm542_vm1, %v1203_v7 }
  0xd9   : > { %1248 = vmatmul.msk.f32.gmra.mxu1 %vm542_vm1, %v1184_v4  ;;  %1267 = vmatmul.msk.f32.gmra.mxu3 %vm542_vm1, %v1203_v7 }
  0xdc   : > { %v436_v32 = vpop.permute.xlu2 %435 }
  0xdd   : > { %v376_v11 = vpop.permute.xlu0 %375  ;;  %v421_v12 = vpop.permute.xlu1 %420  ;;  %vm470_vm8 = vcmp.eq.s32.totalorder %v1654_v50, %v436_v32 }
  0xde   : > { %vm465_vm13 = vcmp.eq.s32.totalorder %v1654_v50, %v421_v12  ;;  %vm450_vm5 = vcmp.eq.s32.totalorder %v1654_v50, %v376_v11  ;;  %v1210_v34 = vsel %vm470_vm8, 1.0, %v1477_v54 }
  0xdf   : > { %v1205_v14 = vsel %vm465_vm13, 1.0, %v1477_v54  ;;  %v1190_v29 = vsel %vm450_vm5, 1.0, %v1477_v54 }
  0xe0   : > { %1217 = vmatmul.msk.f32.gmra.mxu0 %vm542_vm1, %v1185_v9  ;;  %1236 = vmatmul.msk.f32.gmra.mxu2 %vm542_vm1, %v1204_v10 }
  0xe1   : > { %1249 = vmatmul.msk.f32.gmra.mxu1 %vm542_vm1, %v1185_v9  ;;  %1268 = vmatmul.msk.f32.gmra.mxu3 %vm542_vm1, %v1204_v10 }
  0xe4   : > { %v397_v45 = vpop.permute.xlu2 %396 }
  0xe5   : > { %v424_v16 = vpop.permute.xlu0 %423  ;;  %v382_v18 = vpop.permute.xlu1 %381 }
  0xe6   : > { %vm466_vm15 = vcmp.eq.s32.totalorder %v1654_v50, %v424_v16  ;;  %vm452_vm9 = vcmp.eq.s32.totalorder %v1654_v50, %v382_v18 }
  0xe7   : > { %v1206_v19 = vsel %vm466_vm15, 1.0, %v1477_v54  ;;  %v1192_v36 = vsel %vm452_vm9, 1.0, %v1477_v54  ;;  %vm457_vm15 = vcmp.eq.s32.totalorder %v1654_v50, %v397_v45  ;;  %v870_v45 = vshrl.u32 %v310_v49, 7 }
  0xe8   : > { %1218 = vmatmul.msk.f32.gmra.mxu0 %vm542_vm1, %v1186_v13  ;;  %1237 = vmatmul.msk.f32.gmra.mxu2 %vm542_vm1, %v1205_v14  ;;  %v1197_v47 = vsel %vm457_vm15, 1.0, %v1477_v54 }
  0xe9   : > { %1250 = vmatmul.msk.f32.gmra.mxu1 %vm542_vm1, %v1186_v13  ;;  %1269 = vmatmul.msk.f32.gmra.mxu3 %vm542_vm1, %v1205_v14 }
  0xed   : > { %v385_v23 = vpop.permute.xlu0 %384  ;;  %v430_v24 = vpop.permute.xlu1 %429 }
  0xee   : > { %vm468_vm4 = vcmp.eq.s32.totalorder %v1654_v50, %v430_v24  ;;  %vm453_vm11 = vcmp.eq.s32.totalorder %v1654_v50, %v385_v23 }
  0xef   : > { %v1208_v27 = vsel %vm468_vm4, 1.0, %v1477_v54  ;;  %v1193_v38 = vsel %vm453_vm11, 1.0, %v1477_v54 }
  0xf0   : > { %1219 = vmatmul.msk.f32.gmra.mxu0 %vm542_vm1, %v1187_v17  ;;  %1238 = vmatmul.msk.f32.gmra.mxu2 %vm542_vm1, %v1206_v19 }
  0xf1   : > { %1251 = vmatmul.msk.f32.gmra.mxu1 %vm542_vm1, %v1187_v17  ;;  %1270 = vmatmul.msk.f32.gmra.mxu3 %vm542_vm1, %v1206_v19 }
  0xf5   : > { %v433_v28 = vpop.permute.xlu0 %432  ;;  %v391_v30 = vpop.permute.xlu1 %390 }
  0xf6   : > { %vm469_vm6 = vcmp.eq.s32.totalorder %v1654_v50, %v433_v28  ;;  %vm455_vm13 = vcmp.eq.s32.totalorder %v1654_v50, %v391_v30 }
  0xf7   : > { %v1209_v31 = vsel %vm469_vm6, 1.0, %v1477_v54  ;;  %v1195_v40 = vsel %vm455_vm13, 1.0, %v1477_v54 }
  0xf8   : > { %1220 = vmatmul.msk.f32.gmra.mxu0 %vm542_vm1, %v1188_v22  ;;  %1239 = vmatmul.msk.f32.gmra.mxu2 %vm542_vm1, %v1207_v21 }
  0xf9   : > { %1252 = vmatmul.msk.f32.gmra.mxu1 %vm542_vm1, %v1188_v22  ;;  %1271 = vmatmul.msk.f32.gmra.mxu3 %vm542_vm1, %v1207_v21 }
  0xfd   : > { %v439_v35 = vpop.permute.xlu1 %438  ;;  %v394_v41 = vpop.permute.xlu0 %393 }
  0xfe   : > { %vm471_vm10 = vcmp.eq.s32.totalorder %v1654_v50, %v439_v35  ;;  %vm456_vm14 = vcmp.eq.s32.totalorder %v1654_v50, %v394_v41 }
  0xff   : > { %v1211_v37 = vsel %vm471_vm10, 1.0, %v1477_v54  ;;  %v1196_v44 = vsel %vm456_vm14, 1.0, %v1477_v54 }
 0x100   : > { %1221 = vmatmul.msk.f32.gmra.mxu0 %vm542_vm1, %v1189_v26  ;;  %1240 = vmatmul.msk.f32.gmra.mxu2 %vm542_vm1, %v1208_v27 }
 0x101   : > { %1253 = vmatmul.msk.f32.gmra.mxu1 %vm542_vm1, %v1189_v26  ;;  %1272 = vmatmul.msk.f32.gmra.mxu3 %vm542_vm1, %v1208_v27 }
 0x105   : > { %v400_v51 = vpop.permute.xlu0 %399  ;;  %v403_v56 = vpop.permute.xlu1 %402 }
 0x106   : > { %vm458_vm0 = vcmp.eq.s32.totalorder %v1654_v50, %v400_v51  ;;  %vm459_vm2 = vcmp.eq.s32.totalorder %v1654_v50, %v403_v56 }
 0x107   : > { %v1198_v53 = vsel %vm458_vm0, 1.0, %v1477_v54  ;;  %v1199_v60 = vsel %vm459_vm2, 1.0, %v1477_v54 }
 0x108   : > { %1222 = vmatmul.msk.f32.gmra.mxu0 %vm542_vm1, %v1190_v29  ;;  %1241 = vmatmul.msk.f32.gmra.mxu2 %vm542_vm1, %v1209_v31 }
 0x109   : > { %1254 = vmatmul.msk.f32.gmra.mxu1 %vm542_vm1, %v1190_v29  ;;  %1273 = vmatmul.msk.f32.gmra.mxu3 %vm542_vm1, %v1209_v31 }
 0x110   : > { %1223 = vmatmul.msk.f32.gmra.mxu0 %vm542_vm1, %v1191_v33  ;;  %1242 = vmatmul.msk.f32.gmra.mxu2 %vm542_vm1, %v1210_v34 }
 0x111   : > { %1255 = vmatmul.msk.f32.gmra.mxu1 %vm542_vm1, %v1191_v33  ;;  %1274 = vmatmul.msk.f32.gmra.mxu3 %vm542_vm1, %v1210_v34 }
 0x118   : > { %1224 = vmatmul.msk.f32.gmra.mxu0 %vm542_vm1, %v1192_v36  ;;  %1243 = vmatmul.msk.f32.gmra.mxu2 %vm542_vm1, %v1211_v37 }
 0x119   : > { %1256 = vmatmul.msk.f32.gmra.mxu1 %vm542_vm1, %v1192_v36  ;;  %1275 = vmatmul.msk.f32.gmra.mxu3 %vm542_vm1, %v1211_v37  ;;  %v865_v36 = vld [vmem:[%s296_s14] sm:$0x3] }
 0x120   : > { %1225 = vmatmul.msk.f32.gmra.mxu0 %vm542_vm1, %v1193_v38 }
 0x121   : > { %1257 = vmatmul.msk.f32.gmra.mxu1 %vm542_vm1, %v1193_v38  ;;  %v866_v38 = vsub.f32 0.0, %v865_v36 }
 0x128   : > { %1226 = vmatmul.msk.f32.gmra.mxu0 %vm542_vm1, %v1194_v39 }
 0x129   : > { %1258 = vmatmul.msk.f32.gmra.mxu1 %vm542_vm1, %v1194_v39  ;;  %v867_v39 = vmul.f32 1.442695, %v866_v38 }
 0x12b   : > { %1377 = vpow2.f32 %v867_v39 }
 0x130   : > { %1227 = vmatmul.msk.f32.gmra.mxu0 %vm542_vm1, %v1195_v40 }
 0x131   : > { %1259 = vmatmul.msk.f32.gmra.mxu1 %vm542_vm1, %v1195_v40 }
 0x135   : > { %v1772_v42 = vpop.f32.mrf.mxu0  ;;  %v1774_v43 = vpop.f32.mrf.mxu1 }
 0x138   : > { %1228 = vmatmul.msk.f32.gmra.mxu0 %vm542_vm1, %v1196_v44 }
 0x139   : > { %1260 = vmatmul.msk.f32.gmra.mxu1 %vm542_vm1, %v1196_v44  ;;  %v873_v44 = vld [vmem:[%s291_s11] sm:$0x3] }
 0x13a   : > { %v1813_v7 = vpop.f32.mrf.mxu3 }
 0x13d   : > { %v1780_v46 = vpop.f32.mrf.mxu0  ;;  %v1783_v48 = vpop.f32.mrf.mxu1 }
 0x140   : > { %1229 = vmatmul.msk.f32.gmra.mxu0 %vm542_vm1, %v1197_v47 }
 0x141   : > { %1261 = vmatmul.msk.f32.gmra.mxu1 %vm542_vm1, %v1197_v47  ;;  %v874_v47 = vperm.slane %v873_v44, 0 }
 0x145   : > { %v1788_v52 = vpop.f32.mrf.mxu0 }
 0x146   : > { %v1793_v57 = vpop.f32.mrf.mxu1 }
 0x148   : > { %1230 = vmatmul.msk.f32.gmra.mxu0 %vm542_vm1, %v1198_v53 }
 0x149   : > { %1262 = vmatmul.msk.f32.gmra.mxu1 %vm542_vm1, %v1198_v53  ;;  %v1378_v53 = vpop.eup %1377 }
 0x14b   : > { %v719_v58 = vpop.f32.mrf.mxu2 }
 0x14c   : > { %v1817_v11 = vpop.f32.mrf.mxu3 }
 0x14d   : > { %v1796_v59 = vpop.f32.mrf.mxu0 }
 0x14e   : > { %v1801_v62 = vpop.f32.mrf.mxu1 }
 0x150   : > { %1231 = vmatmul.msk.f32.gmra.mxu0 %vm542_vm1, %v1199_v60 }
 0x151   : > { %1263 = vmatmul.msk.f32.gmra.mxu1 %vm542_vm1, %v1199_v60 }
 0x153   : > { %v722_v61 = vpop.f32.mrf.mxu2 }
 0x154   : > { %v1821_v15 = vpop.f32.mrf.mxu3 }
 0x155   : > { %v1803_v63 = vpop.f32.mrf.mxu0 }
 0x156   : > { %v1809_v50 = vpop.f32.mrf.mxu1 }
 0x158   : > { %1232 = vmatmul.msk.f32.gmra.mxu0 %vm542_vm1, %v1658_v55  ;;  %vm876_vm1 = vcmp.eq.s32.totalorder %v870_v45, %v874_v47 }
 0x159   : > { %v1276_v60 = vsel %vm876_vm1, 1.0, %v1477_v54 }
 0x15b   : > { %v725_v0 = vpop.f32.mrf.mxu2 }
 0x15c   : > { %v1825_v20 = vpop.f32.mrf.mxu3 }
 0x15d   : > { %v1807_v1 = vpop.f32.mrf.mxu0 }
 0x15e   : > { %v1811_v4 = vpop.f32.mrf.mxu1 }
 0x163   : > { %v728_v2 = vpop.f32.mrf.mxu2 }
 0x164   : > { %v1829_v24 = vpop.f32.mrf.mxu3 }
 0x165   : > { %v674_v3 = vpop.f32.mrf.mxu0 }
 0x166   : > { %v1815_v8 = vpop.f32.mrf.mxu1 }
 0x16b   : > { %v731_v5 = vpop.f32.mrf.mxu2 }
 0x16c   : > { %v1833_v28 = vpop.f32.mrf.mxu3 }
 0x16d   : > { %v677_v6 = vpop.f32.mrf.mxu0 }
 0x16e   : > { %v1819_v12 = vpop.f32.mrf.mxu1 }
 0x173   : > { %v734_v9 = vpop.f32.mrf.mxu2 }
 0x174   : > { %v1837_v31 = vpop.f32.mrf.mxu3 }
 0x175   : > { %v680_v10 = vpop.f32.mrf.mxu0 }
 0x176   : > { %v1823_v17 = vpop.f32.mrf.mxu1 }
 0x17b   : > { %v737_v55 = vpop.f32.mrf.mxu2 }
 0x17c   : > { %v1841_v35 = vpop.f32.mrf.mxu3 }
 0x17d   : > { %v683_v13 = vpop.f32.mrf.mxu0 }
 0x17e   : > { %v1827_v21 = vpop.f32.mrf.mxu1 }
 0x183   : > { %v740_v14 = vpop.f32.mrf.mxu2 }
 0x184   : > { %v1848_v41 = vpop.f32.mrf.mxu3 }
 0x185   : > { %v686_v16 = vpop.f32.mrf.mxu0 }
 0x186   : > { %v1831_v25 = vpop.f32.mrf.mxu1 }
 0x18b   : > { %v743_v18 = vpop.f32.mrf.mxu2 }
 0x18d   : > { %v689_v19 = vpop.f32.mrf.mxu0 }
 0x18e   : > { %v1835_v29 = vpop.f32.mrf.mxu1 }
 0x193   : > { %v746_v22 = vpop.f32.mrf.mxu2 }
 0x195   : > { %v692_v23 = vpop.f32.mrf.mxu0 }
 0x196   : > { %v805_v33 = vpop.f32.mrf.mxu1 }
 0x19b   : > { %v749_v26 = vpop.f32.mrf.mxu2 }
 0x19c   : > { %937 = vmatpush.msrb.mxu3 %v749_v26 }
 0x19d   : > { %v695_v27 = vpop.f32.mrf.mxu0 }
 0x19e   : > { %938 = vmatpush.msrb.mxu3 %v746_v22  ;;  %v808_v37 = vpop.f32.mrf.mxu1  ;;  %v909_v22 = vld [vmem:[#allocation2 + $0x18] sm:$0xff] }
 0x1a0   : > { %939 = vmatpush.msrb.mxu3 %v743_v18 }
 0x1a2   : > { %940 = vmatpush.msrb.mxu3 %v740_v14 }
 0x1a4   : > { %941 = vmatpush.msrb.mxu3 %v737_v55 }
 0x1a5   : > { %v698_v30 = vpop.f32.mrf.mxu0 }
 0x1a6   : > { %942 = vmatpush.msrb.mxu3 %v734_v9  ;;  %v811_v51 = vpop.f32.mrf.mxu1  ;;  %v896_v9 = vperm.slane %v1378_v53, 1 }
 0x1a8   : > { %943 = vmatpush.msrb.mxu3 %v731_v5 }
 0x1aa   : > { %944 = vmatpush.msrb.mxu3 %v728_v2 }
 0x1ac   : > { %945 = vmatpush.msrb.mxu3 %v725_v0  ;;  %v856_v0 = vpop.f32.mrf.mxu3 }
 0x1ad   : > { %v701_v32 = vpop.f32.mrf.mxu0 }
 0x1ae   : > { %911 = vmatpush.msrb.mxu2 %v701_v32  ;;  %946 = vmatpush.msrb.mxu3 %v722_v61  ;;  %v871_v61 = vadd.s32 8, %v870_v45  ;;  %v814_v2 = vpop.f32.mrf.mxu1  ;;  %v908_v32 = vld [vmem:[#allocation2] sm:$0xff] }
 0x1b0   : > { %912 = vmatpush.msrb.mxu2 %v698_v30  ;;  %947 = vmatpush.msrb.mxu3 %v719_v58  ;;  %v895_v58 = vperm.slane %v1378_v53, 0  ;;  %vm878_vm3 = vcmp.eq.s32.totalorder %v871_v61, %v874_v47 }
 0x1b2   : > { %913 = vmatpush.msrb.mxu2 %v695_v27  ;;  %v899_v49 = vmul.f32 %v1276_v60, %v895_v58  ;;  %v906_v27 = vld [vmem:[#allocation2 + $0x10] sm:$0xff] }
 0x1b4   : > { %914 = vmatpush.msrb.mxu2 %v692_v23 }
 0x1b5   : > { %v1839_v34 = vpop.f32.mrf.mxu0 }
 0x1b6   : > { %915 = vmatpush.msrb.mxu2 %v689_v19 }
 0x1b8   : > { %916 = vmatpush.msrb.mxu2 %v686_v16 }
 0x1ba   : > { %917 = vmatpush.msrb.mxu2 %v683_v13 }
 0x1bc   : > { %918 = vmatpush.msrb.mxu2 %v680_v10 }
 0x1bd   : > { %v707_v40 = vpop.f32.mrf.mxu0 }
 0x1be   : > { %919 = vmatpush.msrb.mxu2 %v677_v6 }
 0x1c0   : > { %920 = vmatpush.msrb.mxu2 %v674_v3  ;;  %v875_v3 = vperm.slane %v873_v44, 1 }
 0x1c2   : > { %921 = vmatpush.msrb.mxu2 %v1807_v1  ;;  %vm877_vm5 = vcmp.eq.s32.totalorder %v870_v45, %v875_v3  ;;  %vm879_vm6 = vcmp.eq.s32.totalorder %v871_v61, %v875_v3 }
 0x1c3   : > { %v1277_v10 = vsel %vm877_vm5, 1.0, %v1477_v54  ;;  %v1279_v16 = vsel %vm879_vm6, 1.0, %v1477_v54 }
 0x1c4   : > { %922 = vmatpush.msrb.mxu2 %v1803_v63  ;;  %v872_v63 = vadd.s32 16, %v870_v45  ;;  %v900_v13 = vmul.f32 %v1277_v10, %v896_v9 }
 0x1c5   : > { %v710_v56 = vpop.f32.mrf.mxu0 }
 0x1c6   : > { %923 = vmatpush.msrb.mxu2 %v1796_v59  ;;  %v1278_v59 = vsel %vm878_vm3, 1.0, %v1477_v54  ;;  %vm880_vm4 = vcmp.eq.s32.totalorder %v872_v63, %v874_v47  ;;  %vm881_vm7 = vcmp.eq.s32.totalorder %v872_v63, %v875_v3 }
 0x1c7   : > { %v901_v5 = vmul.f32 %v1278_v59, %v895_v58 }
 0x1c8   : > { %924 = vmatpush.msrb.mxu2 %v1788_v52  ;;  %v859_v52 = vpop.f32.mrf.mxu3 }
 0x1ca   : > { %925 = vmatpush.msrb.mxu2 %v1780_v46  ;;  %v817_v46 = vpop.f32.mrf.mxu1 }
 0x1cc   : > { %926 = vmatpush.msrb.mxu2 %v1772_v42  ;;  %v1280_v42 = vsel %vm880_vm4, 1.0, %v1477_v54 }
 0x1cd   : > { %v713_v1 = vpop.f32.mrf.mxu0  ;;  %927 = vmatmul.f32.vlgmr.msrb.gmra.mxu2 %v899_v49  ;;  %v903_v55 = vmul.f32 %v1280_v42, %v895_v58 }
 0x1ce   : > { %963 = vmatpush.msra.mxu2 %v814_v2 }
 0x1d0   : > { %964 = vmatpush.msra.mxu2 %v811_v51  ;;  %v862_v14 = vpop.f32.mrf.mxu3 }
 0x1d2   : > { %965 = vmatpush.msra.mxu2 %v808_v37  ;;  %v820_v18 = vpop.f32.mrf.mxu1  ;;  %v910_v37 = vld [vmem:[#allocation2 + $0x20] sm:$0xff] }
 0x1d4   : > { %966 = vmatpush.msra.mxu2 %v805_v33 }
 0x1d5   : > { %v716_v6 = vpop.f32.mrf.mxu0  ;;  %930 = vmatmul.f32.gmra.mxu2 %v901_v5 }
 0x1d6   : > { %967 = vmatpush.msra.mxu2 %v1835_v29  ;;  %948 = vmatpush.msrb.mxu3 %v716_v6 }
 0x1d8   : > { %968 = vmatpush.msra.mxu2 %v1831_v25  ;;  %949 = vmatpush.msrb.mxu3 %v713_v1 }
 0x1da   : > { %969 = vmatpush.msra.mxu2 %v1827_v21  ;;  %950 = vmatpush.msrb.mxu3 %v710_v56 }
 0x1dc   : > { %970 = vmatpush.msra.mxu2 %v1823_v17  ;;  %951 = vmatpush.msrb.mxu3 %v707_v40  ;;  %v902_v17 = vmul.f32 %v1279_v16, %v896_v9 }
 0x1dd   : > { %933 = vmatmul.f32.gmra.mxu2 %v903_v55 }
 0x1de   : > { %971 = vmatpush.msra.mxu2 %v1819_v12  ;;  %952 = vmatpush.msrb.mxu3 %v1839_v34 }
 0x1df   : > { %953 = vmatmul.f32.vlgmr.msrb.gmra.mxu3 %v900_v13 }
 0x1e0   : > { %972 = vmatpush.msra.mxu2 %v1815_v8  ;;  %989 = vmatpush.msra.mxu3 %v862_v14 }
 0x1e2   : > { %973 = vmatpush.msra.mxu2 %v1811_v4  ;;  %990 = vmatpush.msra.mxu3 %v859_v52  ;;  %v1281_v4 = vsel %vm881_vm7, 1.0, %v1477_v54 }
 0x1e4   : > { %974 = vmatpush.msra.mxu2 %v1809_v50  ;;  %991 = vmatpush.msra.mxu3 %v856_v0  ;;  %v823_v50 = vpop.f32.mrf.mxu1 }
 0x1e6   : > { %975 = vmatpush.msra.mxu2 %v1801_v62  ;;  %992 = vmatpush.msra.mxu3 %v1848_v41  ;;  %v904_v62 = vmul.f32 %v1281_v4, %v896_v9 }
 0x1e7   : > { %956 = vmatmul.f32.gmra.mxu3 %v902_v17 }
 0x1e8   : > { %976 = vmatpush.msra.mxu2 %v1793_v57  ;;  %993 = vmatpush.msra.mxu3 %v1841_v35 }
 0x1ea   : > { %977 = vmatpush.msra.mxu2 %v1783_v48  ;;  %994 = vmatpush.msra.mxu3 %v1837_v31  ;;  %v905_v48 = vld [vmem:[#allocation2 + $0x28] sm:$0xff] }
 0x1ec   : > { %978 = vmatpush.msra.mxu2 %v1774_v43  ;;  %995 = vmatpush.msra.mxu3 %v1833_v28  ;;  %v826_v54 = vpop.f32.mrf.mxu1 }
 0x1ed   : > { %979 = vmatmul.f32.vlgmr.msra.gmra.mxu2 %v899_v49 }
 0x1ee   : > { %996 = vmatpush.msra.mxu3 %v1829_v24 }
 0x1ef   : > { %959 = vmatmul.f32.gmra.mxu3 %v904_v62 }
 0x1f0   : > { %997 = vmatpush.msra.mxu3 %v1825_v20 }
 0x1f2   : > { %998 = vmatpush.msra.mxu3 %v1821_v15 }
 0x1f4   : > { %999 = vmatpush.msra.mxu3 %v1817_v11  ;;  %v907_v11 = vld [vmem:[#allocation2 + $0x8] sm:$0xff] }
 0x1f5   : > { %982 = vmatmul.f32.gmra.mxu2 %v901_v5 }
 0x1f6   : > { %1000 = vmatpush.msra.mxu3 %v1813_v7 }
 0x1f8   : > { %1001 = vmatpush.msra.mxu3 %v826_v54 }
 0x1fa   : > { %1002 = vmatpush.msra.mxu3 %v823_v50 }
 0x1fc   : > { %1003 = vmatpush.msra.mxu3 %v820_v18 }
 0x1fd   : > { %985 = vmatmul.f32.gmra.mxu2 %v903_v55 }
 0x1fe   : > { %1004 = vmatpush.msra.mxu3 %v817_v46 }
 0x1ff   : > { %1005 = vmatmul.f32.vlgmr.msra.gmra.mxu3 %v900_v13 }
 0x207   : > { %1008 = vmatmul.f32.gmra.mxu3 %v902_v17 }
 0x20f   : > { %1011 = vmatmul.f32.gmra.mxu3 %v904_v62 }
 0x250   : > { %v928_v43 = vpop.f32.mrf.mxu2 }
 0x258   : > { %v931_v15 = vpop.f32.mrf.mxu2 }
 0x260   : > { %v934_v21 = vpop.f32.mrf.mxu2 }
 0x262   : > { %v954_v57 = vpop.f32.mrf.mxu3 }
 0x263   : > { %v955_v8 = vadd.f32 %v954_v57, %v928_v43 }
 0x265   : > { %v1015_v12 = vadd.f32 %v955_v8, %v905_v48 }
 0x267   : > { %1021 = vst [vmem:[#allocation2 + $0x28] sm:$0xff] %v1015_v12 }
 0x26a   : > { %v957_v19 = vpop.f32.mrf.mxu3 }
 0x26b   : > { %v958_v20 = vadd.f32 %v957_v19, %v931_v15 }
 0x26d   : > { %v1017_v7 = vadd.f32 %v958_v20, %v907_v11 }
 0x26f   : > { %1023 = vst [vmem:[#allocation2 + $0x8] sm:$0xff] %v1017_v7 }
 0x270   : > { %v980_v26 = vpop.f32.mrf.mxu2 }
 0x272   : > { %v960_v23 = vpop.f32.mrf.mxu3 }
 0x273   : > { %v961_v24 = vadd.f32 %v960_v23, %v934_v21 }
 0x275   : > { %v1019_v25 = vadd.f32 %v961_v24, %v909_v22 }
 0x277   : > { %1025 = vst [vmem:[#allocation2 + $0x18] sm:$0xff] %v1019_v25 }
 0x278   : > { %v983_v31 = vpop.f32.mrf.mxu2 }
 0x280   : > { %v986_v36 = vpop.f32.mrf.mxu2 }
 0x282   : > { %v1006_v28 = vpop.f32.mrf.mxu3 }
 0x283   : > { %v1007_v29 = vadd.f32 %v1006_v28, %v980_v26 }
 0x285   : > { %v1016_v30 = vadd.f32 %v1007_v29, %v906_v27 }
 0x287   : > { %1022 = vst [vmem:[#allocation2 + $0x10] sm:$0xff] %v1016_v30 }
 0x28a   : > { %v1009_v33 = vpop.f32.mrf.mxu3 }
 0x28b   : > { %v1010_v34 = vadd.f32 %v1009_v33, %v983_v31 }
 0x28d   : > { %v1018_v35 = vadd.f32 %v1010_v34, %v908_v32 }
 0x28f   : > { %1024 = vst [vmem:[#allocation2] sm:$0xff] %v1018_v35 }
 0x292   : > { %v1012_v38 = vpop.f32.mrf.mxu3 }
 0x293   : > { %v1013_v39 = vadd.f32 %v1012_v38, %v986_v36  ;;  %1030 = sbr.rel (%p1282_p4) target bundleno = 672 (0x2a0), region = 67 }
 0x295   : > { %v1020_v40 = vadd.f32 %v1013_v39, %v910_v37 }
 0x297   : > { %1026 = vst [vmem:[#allocation2 + $0x20] sm:$0xff] %v1020_v40 }
 0x298   : > { %v1031_v41 = vld [vmem:[#allocation2 + $0x28] sm:$0xff]  ;;  %v1032_v44 = vld [vmem:[#allocation2 + $0x10] sm:$0xff]  ;;  %v1034_v47 = vld [vmem:[#allocation2] sm:$0xff] }
 0x299   : > { %v1033_v45 = vld [vmem:[#allocation2 + $0x8] sm:$0xff]  ;;  %1037 = vst [vmem:[%s1610_s23] sm:$0xff] %v1031_v41  ;;  %v1035_v51 = vld [vmem:[#allocation2 + $0x18] sm:$0xff] }
 0x29a   : > { %1038 = vst [vmem:[%s1610_s23 + $0x8] sm:$0xff] %v1032_v44 }
 0x29b   : > { %1039 = vst [vmem:[%s1610_s23 + $0x10] sm:$0xff] %v1033_v45 }
 0x29c   : > { %1040 = vst [vmem:[%s1610_s23 + $0x18] sm:$0xff] %v1034_v47 }
 0x29d   : > { %1041 = vst [vmem:[%s1610_s23 + $0x20] sm:$0xff] %v1035_v51 }
 0x29e   : > { %v1036_v53 = vld [vmem:[#allocation2 + $0x20] sm:$0xff] }
 0x29f   : > { %1042 = vst [vmem:[%s1610_s23 + $0x28] sm:$0xff] %v1036_v53 }
 0x2a0 PF: > { %s1288_s18 = sshll.u32 %s1461_s19, 4  ;;  %s1056_s8 = sshll.u32 %s1610_s23, 4  ;;  %s1057_s8 = int_to_ptr.vmem [resolvable:$true] %s1056_s8 }
 0x2a1   : > { %s1055_s7 = scalar_lea.hbm %s1946_s4, %s1288_s18  ;;  %s1953_s10 = sand.u32 1, %s1449_s16  }
 0x2a2   : > { %s1058_s9 = sshll.u32 %s1055_s7, 4  ;;  %s1044_s11 = scalar_lea.sflag [#allocation5], %s1953_s10  ;;  %s1059_s9 = int_to_ptr.hbm [resolvable:$true] %s1058_s9 }
 0x2a3   : > { %s1393_s12 = sshra.s32 %s1059_s9, 4  ;;  %s1399_s19 = scalar_lea.hbm %s1946_s4, 96  ;;  %s1394_s12 = int_to_ptr.hbm [resolvable:$true] %s1393_s12 }
 0x2a4   : > { %s1395_s13 = scalar_lea.hbm %s1394_s12, 48  ;;  %p1400_p10 = scmp.lt.s32.totalorder %s1394_s12, %s1946_s4 }
 0x2a5   : > { %p1396_p5 = scmp.ne.s32.totalorder %s1394_s12, %s1395_s13  ;;  %p1401_p11 = scmp.lt.s32.totalorder %s1399_s19, %s1395_s13 }
 0x2a7   : > { %p1397_p6 = pnand %p1396_p5, %p1562_p7  ;;  %p1402_p12 = por %p1401_p11, %p1400_p10 }
 0x2a9   : > { %p1398_p8 = pneg %p1397_p6 }
 0x2ab   : > { %p1403_p13 = pnand %p1402_p12, %p1398_p8 }
 0x2ad   : > { %1406 = shalt.err (!%p1403_p13)
}
 0x2ae   : > { %s1478_s23 = smov 256   ;;  %s1479_s18 = smov 512  }
 0x2af   : > { %s1480_s14 = smov 16  }
 0x2b0   : > { %1297 = dma.vmem_to_hbm [thread:$0]  (%p1562_p7), %s1057_s8, 768, %s1059_s9, %s1044_s11, %s1478_s23, %s1479_s18, %s1480_s14  }
 0x2b1 PF: > { %p1303_p0 = scmp.ge.s32.totalorder %s1473_s22, 2  ;;  %s1073_s27 = sand.u32 1, %s1445_s15  }
 0x2b2   : > { %s1074_s7 = scalar_lea.sflag [#allocation5], %s1073_s27 }
 0x2b3   : > { %p1300_p1 = pnand %p1303_p0, %p1568_p9 }
 0x2b5   : > { %p1301_p2 = pneg %p1300_p1 }
 0x2b7   : > { %1440 = dma.done.wait (%p1301_p2), %s1074_s7, 768  }
 0x2b8   : > { %1442 = vsyncadd (%p1301_p2), %s1074_s7, 4294966528  ;;  %s17_s22 = sadd.s32 1, %s1473_s22   ;;  %s1954_s15 = smov %s1449_s16 }
 0x2b9   : > { %p14_p3 = scmp.ge.s32.totalorder %s17_s22, 6   ;;  %s1955_s16 = smov %s1453_s17 }
 0x2ba   : > { %s1956_s17 = smov %s1576_s6  ;;  %s1957_s18 = smov %s1465_s20 }
 0x2bb   : > { %s1958_s19 = smov %s1469_s21  ;;  %s1959_s20 = smov %s1962_s25 }
 0x2bc   : > { %s1960_s21 = smov %s1966_s26  ;;  %16 = sbr.rel (!%p14_p3) target bundleno = 7 (0x7), region = 116 }
 0x2c1   :  { %1080 = vsyncpa [#allocation5], 1 }
 0x2c2   :  { %1082 = vsyncpa [#allocation5 + $0x1], 1 }

</bundles_post_ra>
